<compile_context>
chip_gen: v5e
topology: v5e:2x2
jax: 0.10.0
libtpu: 0.0.40
codegen_flags: <defaults>
</compile_context>

<pallas_src>
import functools

import jax
import jax.numpy as jnp
from jax.experimental import pallas as pl
from jax.experimental.pallas import tpu as pltpu

# Older JAX releases spell this pltpu.TPUCompilerParams.
_CompilerParams = getattr(pltpu, "CompilerParams", None) or getattr(
    pltpu, "TPUCompilerParams")


def _choose_tile_rows(hw: int, bytes_per_row: int, target_bytes: int = 1 << 20) -> int:
    """Largest multiple-of-8 divisor of `hw` whose per-block bytes <= target."""
    if hw % 8 != 0:
        return hw                      # block must then span the full dimension
    max_rows = max(8, target_bytes // max(bytes_per_row, 1))
    best, t = 8, 8
    while t <= hw:
        if hw % t == 0 and t <= max_rows:
            best = t
        t += 8
    return best


# ---------------------------------------------------------------------------
# Pass 1: conv3x3 (single MXU matmul over the im2col K axis) + bias,
#         fused per-tile BN (sum, sum-of-squares) epilogue in f32.
# ---------------------------------------------------------------------------
def _conv_stats_kernel(x_ref, w_ref, b_ref, y_ref, s1_ref, s2_ref):
    # x_ref : (1, TM, 9*Cin) bf16   im2col rows for this spatial tile
    # w_ref : (9*Cin, Cout)  bf16   resident weights (constant index_map)
    # b_ref : (1, Cout)      f32    conv bias
    # y_ref : (1, TM, Cout)  bf16   conv output (pre-BN)
    # s1/s2 : (1, 1, Cout)   f32    per-tile partial sum / sum-of-squares
    acc = jnp.dot(x_ref[0], w_ref[...],
                  preferred_element_type=jnp.float32)      # (TM, Cout) f32, MXU
    acc = acc + b_ref[...]                                 # broadcast (1, Cout)
    y_ref[0] = acc.astype(y_ref.dtype)                     # bf16 writeback
    # TODO(synk): E[y^2]-E[y]^2 in f32 can lose precision when |mean| >> std;
    # a mean-shifted two-pass reduction would be tighter if ever needed.
    s1_ref[0] = jnp.sum(acc, axis=0, keepdims=True)        # (1, Cout)
    s2_ref[0] = jnp.sum(acc * acc, axis=0, keepdims=True)  # (1, Cout)


# ---------------------------------------------------------------------------
# Pass 2: memory-bound y * scale + shift, then ReLU (scale/shift prefolded).
# ---------------------------------------------------------------------------
def _bn_relu_kernel(y_ref, scale_ref, shift_ref, o_ref):
    y = y_ref[...].astype(jnp.float32)                     # (1, TM, Cout)
    o_ref[...] = jnp.maximum(y * scale_ref[...] + shift_ref[...], 0.0)


# ---------------------------------------------------------------------------
# Wrapper
# ---------------------------------------------------------------------------
@functools.partial(jax.jit, static_argnames=("eps",))
def downconv_block(x, weight, bias, gamma, beta, eps=1e-5):
    """DownconvBlock forward.

    x:      (N, Cin, H, W) float32 (NCHW, PyTorch layout)
    weight: (Cout, Cin, 3, 3); bias/gamma/beta: (Cout,)
    returns (N, Cout, H, W) float32
    """
    N, Cin, H, W = x.shape
    Cout = weight.shape[0]
    HW = H * W
    K = 9 * Cin

    # Layout prep (one fused XLA pass): NCHW -> NHWC bf16, spatial pad=1,
    # im2col along channels -> (N, H*W, 9*Cin).
    x_nhwc = jnp.transpose(x.astype(jnp.bfloat16), (0, 2, 3, 1))
    x_pad = jnp.pad(x_nhwc, ((0, 0), (1, 1), (1, 1), (0, 0)))
    x_col = jnp.concatenate(
        [x_pad[:, dy:dy + H, dx:dx + W, :] for dy in range(3) for dx in range(3)],
        axis=-1).reshape(N, HW, K)

    # (Cout, Cin, 3, 3) -> (9*Cin, Cout); tap order matches x_col's channel order.
    w_mat = jnp.transpose(weight, (2, 3, 1, 0)).reshape(K, Cout).astype(jnp.bfloat16)
    b2 = bias.astype(jnp.float32).reshape(1, Cout)

    # Tile the flattened spatial dim (multiple of 8 sublanes, bounded VMEM).
    bytes_per_row = K * 2 + Cout * 2 + Cout * 4   # x bf16 + y bf16 + f32 acc
    TM = _choose_tile_rows(HW, bytes_per_row)
    num_tiles = HW // TM
    G = N * num_tiles

    cparams = _CompilerParams(
        dimension_semantics=("parallel", "parallel"),
        vmem_limit_bytes=64 * 1024 * 1024)

    # --- pass 1: conv (1 MXU matmul per tile) + bias + per-tile BN stats ---
    y_bf16, ysum, ysq = pl.pallas_call(
        _conv_stats_kernel,
        out_shape=(
            jax.ShapeDtypeStruct((N, HW, Cout), jnp.bfloat16),
            jax.ShapeDtypeStruct((G, 1, Cout), jnp.float32),
            jax.ShapeDtypeStruct((G, 1, Cout), jnp.float32),
        ),
        grid=(N, num_tiles),
        in_specs=[
            pl.BlockSpec((1, TM, K), lambda n, t: (n, t, 0)),
            pl.BlockSpec((K, Cout), lambda n, t: (0, 0)),    # resident weights
            pl.BlockSpec((1, Cout), lambda n, t: (0, 0)),
        ],
        out_specs=[
            pl.BlockSpec((1, TM, Cout), lambda n, t: (n, t, 0)),
            pl.BlockSpec((1, 1, Cout), lambda n, t: (n * num_tiles + t, 0, 0)),
            pl.BlockSpec((1, 1, Cout), lambda n, t: (n * num_tiles + t, 0, 0)),
        ],
        compiler_params=cparams,
    )(x_col, w_mat, b2)

    # Tiny O(C) combine + BN parameter folding in the wrapper.
    count = float(N * HW)
    s1 = jnp.sum(ysum, axis=(0, 1))                        # (Cout,)
    s2 = jnp.sum(ysq, axis=(0, 1))
    mean = s1 / count
    var = jnp.maximum(s2 / count - mean * mean, 0.0)       # biased (training) variance
    scale = (gamma.astype(jnp.float32) * jax.lax.rsqrt(var + float(eps))).reshape(1, Cout)
    shift = (beta.astype(jnp.float32) - mean * scale[0]).reshape(1, Cout)

    # --- pass 2: memory-bound FMA + ReLU sweep over the bf16 conv intermediate ---
    out_flat = pl.pallas_call(
        _bn_relu_kernel,
        out_shape=jax.ShapeDtypeStruct((N, HW, Cout), jnp.float32),
        grid=(N, num_tiles),
        in_specs=[
            pl.BlockSpec((1, TM, Cout), lambda n, t: (n, t, 0)),
            pl.BlockSpec((1, Cout), lambda n, t: (0, 0)),
            pl.BlockSpec((1, Cout), lambda n, t: (0, 0)),
        ],
        out_specs=pl.BlockSpec((1, TM, Cout), lambda n, t: (n, t, 0)),
        compiler_params=cparams,
    )(y_bf16, scale, shift)

    # NHWC(flat) -> NCHW to match the PyTorch module.
    return jnp.transpose(out_flat.reshape(N, H, W, Cout), (0, 3, 1, 2))


# ---------------------------------------------------------------------------
# Pure-JAX reference (Conv2d -> training-mode BatchNorm2d -> ReLU)
# ---------------------------------------------------------------------------
def _reference(x, weight, bias, gamma, beta, eps=1e-5):
    y = jax.lax.conv_general_dilated(
        x, weight, window_strides=(1, 1), padding=((1, 1), (1, 1)),
        dimension_numbers=("NCHW", "OIHW", "NCHW"),
        precision=jax.lax.Precision.HIGHEST)
    y = y + bias[None, :, None, None]
    mean = jnp.mean(y, axis=(0, 2, 3), keepdims=True)
    var = jnp.mean((y - mean) ** 2, axis=(0, 2, 3), keepdims=True)  # biased
    y = (y - mean) * jax.lax.rsqrt(var + eps)
    y = y * gamma[None, :, None, None] + beta[None, :, None, None]
    return jnp.maximum(y, 0.0)


if __name__ == "__main__":
    key = jax.random.PRNGKey(0)
    kx, kw, kb, kg, kbe = jax.random.split(key, 5)

    N, Cin, H, W, Cout = 2, 4, 16, 16, 8
    x = jax.random.normal(kx, (N, Cin, H, W), jnp.float32)
    weight = 0.1 * jax.random.normal(kw, (Cout, Cin, 3, 3), jnp.float32)
    bias = 0.1 * jax.random.normal(kb, (Cout,), jnp.float32)
    gamma = 1.0 + 0.1 * jax.random.normal(kg, (Cout,), jnp.float32)
    beta = 0.1 * jax.random.normal(kbe, (Cout,), jnp.float32)

    out = jax.block_until_ready(downconv_block(x, weight, bias, gamma, beta))

    ref = jax.block_until_ready(_reference(x, weight, bias, gamma, beta))
    max_err = float(jnp.max(jnp.abs(out - ref)))
    assert out.shape == (N, Cout, H, W), out.shape
    assert max_err < 5e-2, f"mismatch vs reference: max abs err = {max_err}"
    print("KERNEL_OK")
</pallas_src>

<mosaic_0001>
module attributes {stable_mosaic.version = 11 : i64} {
  func.func @_conv_stats_kernel(%arg0: i32, %arg1: i32, %arg2: memref<1x256x36xbf16, #tpu.memory_space<vmem>>, %arg3: memref<36x8xbf16, #tpu.memory_space<vmem>>, %arg4: memref<1x8xf32, #tpu.memory_space<vmem>>, %arg5: memref<1x256x8xbf16, #tpu.memory_space<vmem>>, %arg6: memref<1x1x8xf32, #tpu.memory_space<vmem>>, %arg7: memref<1x1x8xf32, #tpu.memory_space<vmem>>) attributes {dimension_semantics = [#tpu.dimension_semantics<parallel>, #tpu.dimension_semantics<parallel>], iteration_bounds = array<i64: 2, 1>, scalar_prefetch = 0 : i64, scratch_operands = 0 : i64, tpu.core_type = #tpu.core_type<tc>, window_params = [{transform_indices = @transform_0, window_bounds = array<i64: 1, 256, 36>}, {pipeline_mode = #tpu.pipeline_mode<synchronous>, transform_indices = @transform_1, window_bounds = array<i64: 36, 8>}, {pipeline_mode = #tpu.pipeline_mode<synchronous>, transform_indices = @transform_2, window_bounds = array<i64: 1, 8>}, {transform_indices = @transform_3, window_bounds = array<i64: 1, 256, 8>}, {transform_indices = @transform_4, window_bounds = array<i64: 1, 1, 8>}, {transform_indices = @transform_5, window_bounds = array<i64: 1, 1, 8>}]} {
    %c0 = arith.constant 0 : index
    %c0_0 = arith.constant 0 : index
    %c0_1 = arith.constant 0 : index
    %0 = vector.load %arg2[%c0, %c0_0, %c0_1] : memref<1x256x36xbf16, #tpu.memory_space<vmem>>, vector<1x256x36xbf16>
    %1 = vector.shape_cast %0 : vector<1x256x36xbf16> to vector<256x36xbf16>
    %c0_2 = arith.constant 0 : index
    %c0_3 = arith.constant 0 : index
    %2 = vector.load %arg3[%c0_2, %c0_3] : memref<36x8xbf16, #tpu.memory_space<vmem>>, vector<36x8xbf16>
    %cst = arith.constant dense<0.000000e+00> : vector<256x8xf32>
    %3 = tpu.matmul %1, %2, %cst {dimension_numbers = #tpu.dot_dimension_numbers<[1], [0], [0], [1], [0, 0, 1, 1], [], []>} : vector<256x36xbf16>, vector<36x8xbf16>, vector<256x8xf32> -> vector<256x8xf32>
    %c0_4 = arith.constant 0 : index
    %c0_5 = arith.constant 0 : index
    %4 = vector.load %arg4[%c0_4, %c0_5] : memref<1x8xf32, #tpu.memory_space<vmem>>, vector<1x8xf32>
    %5 = vector.broadcast %4 : vector<1x8xf32> to vector<256x8xf32>
    %6 = arith.addf %3, %5 : vector<256x8xf32>
    %7 = arith.truncf %6 : vector<256x8xf32> to vector<256x8xbf16>
    %c0_6 = arith.constant 0 : index
    %c0_7 = arith.constant 0 : index
    %c0_8 = arith.constant 0 : index
    %8 = vector.load %arg5[%c0_6, %c0_7, %c0_8] : memref<1x256x8xbf16, #tpu.memory_space<vmem>>, vector<1x256x8xbf16>
    %9 = vector.shape_cast %8 : vector<1x256x8xbf16> to vector<256x8xbf16>
    %10 = vector.shape_cast %7 : vector<256x8xbf16> to vector<1x256x8xbf16>
    tpu.vector_store %arg5[%c0_6, %c0_7, %c0_8], %10 {strides = array<i32>} : memref<1x256x8xbf16, #tpu.memory_space<vmem>>, vector<1x256x8xbf16>,
    %cst_9 = arith.constant dense<0.000000e+00> : vector<8xf32>
    %11 = vector.multi_reduction <add>, %6, %cst_9 [0] : vector<256x8xf32> to vector<8xf32>
    %12 = vector.shape_cast %11 : vector<8xf32> to vector<1x8xf32>
    %c0_10 = arith.constant 0 : index
    %c0_11 = arith.constant 0 : index
    %c0_12 = arith.constant 0 : index
    %13 = vector.load %arg6[%c0_10, %c0_11, %c0_12] : memref<1x1x8xf32, #tpu.memory_space<vmem>>, vector<1x1x8xf32>
    %14 = vector.shape_cast %13 : vector<1x1x8xf32> to vector<1x8xf32>
    %15 = vector.shape_cast %12 : vector<1x8xf32> to vector<1x1x8xf32>
    tpu.vector_store %arg6[%c0_10, %c0_11, %c0_12], %15 {strides = array<i32>} : memref<1x1x8xf32, #tpu.memory_space<vmem>>, vector<1x1x8xf32>,
    %16 = arith.mulf %6, %6 : vector<256x8xf32>
    %cst_13 = arith.constant dense<0.000000e+00> : vector<8xf32>
    %17 = vector.multi_reduction <add>, %16, %cst_13 [0] : vector<256x8xf32> to vector<8xf32>
    %18 = vector.shape_cast %17 : vector<8xf32> to vector<1x8xf32>
    %c0_14 = arith.constant 0 : index
    %c0_15 = arith.constant 0 : index
    %c0_16 = arith.constant 0 : index
    %19 = vector.load %arg7[%c0_14, %c0_15, %c0_16] : memref<1x1x8xf32, #tpu.memory_space<vmem>>, vector<1x1x8xf32>
    %20 = vector.shape_cast %19 : vector<1x1x8xf32> to vector<1x8xf32>
    %21 = vector.shape_cast %18 : vector<1x8xf32> to vector<1x1x8xf32>
    tpu.vector_store %arg7[%c0_14, %c0_15, %c0_16], %21 {strides = array<i32>} : memref<1x1x8xf32, #tpu.memory_space<vmem>>, vector<1x1x8xf32>,
    return
  }
  func.func @transform_0(%arg0: i32, %arg1: i32) -> (i32, i32, i32) {
    %c0_i32 = arith.constant 0 : i32
    %c0_i32_0 = arith.constant 0 : i32
    return %arg0, %arg1, %c0_i32 : i32, i32, i32
  }
  func.func @transform_1(%arg0: i32, %arg1: i32) -> (i32, i32) {
    %c0_i32 = arith.constant 0 : i32
    %c0_i32_0 = arith.constant 0 : i32
    %c0_i32_1 = arith.constant 0 : i32
    return %c0_i32, %c0_i32_0 : i32, i32
  }
  func.func @transform_2(%arg0: i32, %arg1: i32) -> (i32, i32) {
    %c0_i32 = arith.constant 0 : i32
    %c0_i32_0 = arith.constant 0 : i32
    %c0_i32_1 = arith.constant 0 : i32
    return %c0_i32, %c0_i32_0 : i32, i32
  }
  func.func @transform_3(%arg0: i32, %arg1: i32) -> (i32, i32, i32) {
    %c0_i32 = arith.constant 0 : i32
    %c0_i32_0 = arith.constant 0 : i32
    return %arg0, %arg1, %c0_i32 : i32, i32, i32
  }
  func.func @transform_4(%arg0: i32, %arg1: i32) -> (i32, i32, i32) {
    %c1_i32 = arith.constant 1 : i32
    %0 = arith.muli %arg0, %c1_i32 : i32
    %1 = arith.addi %0, %arg1 : i32
    %c0_i32 = arith.constant 0 : i32
    %c0_i32_0 = arith.constant 0 : i32
    %c0_i32_1 = arith.constant 0 : i32
    return %1, %c0_i32, %c0_i32_0 : i32, i32, i32
  }
  func.func @transform_5(%arg0: i32, %arg1: i32) -> (i32, i32, i32) {
    %c1_i32 = arith.constant 1 : i32
    %0 = arith.muli %arg0, %c1_i32 : i32
    %1 = arith.addi %0, %arg1 : i32
    %c0_i32 = arith.constant 0 : i32
    %c0_i32_0 = arith.constant 0 : i32
    %c0_i32_1 = arith.constant 0 : i32
    return %1, %c0_i32, %c0_i32_0 : i32, i32, i32
  }
}

module attributes {stable_mosaic.version = 11 : i64} {
  func.func @_bn_relu_kernel(%arg0: i32, %arg1: i32, %arg2: memref<1x256x8xbf16, #tpu.memory_space<vmem>>, %arg3: memref<1x8xf32, #tpu.memory_space<vmem>>, %arg4: memref<1x8xf32, #tpu.memory_space<vmem>>, %arg5: memref<1x256x8xf32, #tpu.memory_space<vmem>>) attributes {dimension_semantics = [#tpu.dimension_semantics<parallel>, #tpu.dimension_semantics<parallel>], iteration_bounds = array<i64: 2, 1>, scalar_prefetch = 0 : i64, scratch_operands = 0 : i64, tpu.core_type = #tpu.core_type<tc>, window_params = [{transform_indices = @transform_0, window_bounds = array<i64: 1, 256, 8>}, {pipeline_mode = #tpu.pipeline_mode<synchronous>, transform_indices = @transform_1, window_bounds = array<i64: 1, 8>}, {pipeline_mode = #tpu.pipeline_mode<synchronous>, transform_indices = @transform_2, window_bounds = array<i64: 1, 8>}, {transform_indices = @transform_3, window_bounds = array<i64: 1, 256, 8>}]} {
    %c0 = arith.constant 0 : index
    %c0_0 = arith.constant 0 : index
    %c0_1 = arith.constant 0 : index
    %0 = vector.load %arg2[%c0, %c0_0, %c0_1] : memref<1x256x8xbf16, #tpu.memory_space<vmem>>, vector<1x256x8xbf16>
    %1 = arith.extf %0 : vector<1x256x8xbf16> to vector<1x256x8xf32>
    %c0_2 = arith.constant 0 : index
    %c0_3 = arith.constant 0 : index
    %2 = vector.load %arg3[%c0_2, %c0_3] : memref<1x8xf32, #tpu.memory_space<vmem>>, vector<1x8xf32>
    %3 = vector.shape_cast %2 : vector<1x8xf32> to vector<1x1x8xf32>
    %4 = vector.broadcast %3 : vector<1x1x8xf32> to vector<1x256x8xf32>
    %5 = arith.mulf %1, %4 : vector<1x256x8xf32>
    %c0_4 = arith.constant 0 : index
    %c0_5 = arith.constant 0 : index
    %6 = vector.load %arg4[%c0_4, %c0_5] : memref<1x8xf32, #tpu.memory_space<vmem>>, vector<1x8xf32>
    %7 = vector.shape_cast %6 : vector<1x8xf32> to vector<1x1x8xf32>
    %8 = vector.broadcast %7 : vector<1x1x8xf32> to vector<1x256x8xf32>
    %9 = arith.addf %5, %8 : vector<1x256x8xf32>
    %cst = arith.constant 0.000000e+00 : f32
    %10 = vector.broadcast %cst : f32 to vector<1x256x8xf32>
    %11 = arith.maximumf %9, %10 : vector<1x256x8xf32>
    %c0_6 = arith.constant 0 : index
    %c0_7 = arith.constant 0 : index
    %c0_8 = arith.constant 0 : index
    %12 = vector.load %arg5[%c0_6, %c0_7, %c0_8] : memref<1x256x8xf32, #tpu.memory_space<vmem>>, vector<1x256x8xf32>
    tpu.vector_store %arg5[%c0_6, %c0_7, %c0_8], %11 {strides = array<i32>} : memref<1x256x8xf32, #tpu.memory_space<vmem>>, vector<1x256x8xf32>,
    return
  }
  func.func @transform_0(%arg0: i32, %arg1: i32) -> (i32, i32, i32) {
    %c0_i32 = arith.constant 0 : i32
    %c0_i32_0 = arith.constant 0 : i32
    return %arg0, %arg1, %c0_i32 : i32, i32, i32
  }
  func.func @transform_1(%arg0: i32, %arg1: i32) -> (i32, i32) {
    %c0_i32 = arith.constant 0 : i32
    %c0_i32_0 = arith.constant 0 : i32
    %c0_i32_1 = arith.constant 0 : i32
    return %c0_i32, %c0_i32_0 : i32, i32
  }
  func.func @transform_2(%arg0: i32, %arg1: i32) -> (i32, i32) {
    %c0_i32 = arith.constant 0 : i32
    %c0_i32_0 = arith.constant 0 : i32
    %c0_i32_1 = arith.constant 0 : i32
    return %c0_i32, %c0_i32_0 : i32, i32
  }
  func.func @transform_3(%arg0: i32, %arg1: i32) -> (i32, i32, i32) {
    %c0_i32 = arith.constant 0 : i32
    %c0_i32_0 = arith.constant 0 : i32
    return %arg0, %arg1, %c0_i32 : i32, i32, i32
  }
}

</mosaic_0001>

<bundles_post_ra>
// kernel: downconv_block.3
= control target key start
LH: loop header
LB: loop body
LE: loop exit
PB: predicated region body
PF: predicated region fallthrough
CT: control target
= control target key end

     0   :  { %s660_s12 = smov 0   ;;  %s662_s13 = smov 0   ;;  %s855_s0 = inlined_call_operand.vmem [shape: bf16[2,256,8], index: 0, kind: input, shape index: {}]   ;;  %s856_s1 = inlined_call_operand.vmem [shape: f32[1,8], index: 1, kind: input, shape index: {}]   ;;  %s857_s2 = inlined_call_operand.vmem [shape: f32[1,8], index: 2, kind: input, shape index: {}]   ;;  %s858_s3 = inlined_call_operand.vmem [shape: f32[2,256,8], index: 3, kind: output, shape index: {}]  }
   0x1   :  { %s664_s14 = smov 0  }
   0x2 LB: > { %s25_s15 = sadd.s32 1, %s634_s13  ;;  %p502_p0 = scmp.ge.s32.totalorder %s638_s14, 1  ;;  %s638_s14 = sphi %s664_s14, %s13_s14   ;;  %s634_s13 = sphi %s662_s13, %s860_s13   ;;  %s630_s12 = sphi %s660_s12, %s859_s12  }
   0x3   : > { %p27_p1 = scmp.ge.s32.totalorder %s25_s15, 2  ;;  %p158_p2 = scmp.lt.s32.totalorder %s638_s14, 3 }
   0x5   : > { %s862_s15 = smov (%p27_p1, %s25_s15), 0  ;;  %p159_p3 = pnand %p502_p0, %p158_p2 }
   0x6   : > { %p191_p4 = scmp.lt.s32.totalorder (!%p159_p3), %s630_s12, 1 }
   0x7   : > { %162 = sbr.rel (%p159_p3) target bundleno = 56 (0x38), region = 32 }
   0xc   : > { %s864_s12 = smov (!%p191_p4, %s630_s12), 1  ;;  %v689_v0 = vld [vmem:[%s856_s1] ss:$0 sm:$0xff]  ;;  %vm378_vm0 = vcmask 64512  }
   0xd   : > { %s509_s16 = sshll.u32 %s864_s12, 7  ;;  %v697_v5 = vld [vmem:[%s857_s2] ss:$0 sm:$0xff]  ;;  %s510_s24 = sshll.u32 %s864_s12, 8 }
   0xe   : > { %s684_s19 = scalar_lea.vmem %s855_s0, %s509_s16  ;;  %s716_s27 = scalar_lea.vmem %s858_s3, %s510_s24 }
   0xf   : > { %v512_v1 = vld [vmem:[%s684_s19] sm:$0xff]   ;;  %v575_v2 = vld [vmem:[%s684_s19 + $0x8] sm:$0xff]   ;;  %v576_v3 = vld [vmem:[%s684_s19 + $0x10] sm:$0xff]  }
  0x10   : > { %v513_v4 = vunpack.c.l.bf16 %v512_v1  ;;  %v514_v6 = vunpack.c.h.bf16 %v512_v1  ;;  %v517_v7 = vunpack.c.l.bf16 %v575_v2  ;;  %v518_v8 = vunpack.c.h.bf16 %v575_v2  ;;  %v577_v9 = vld [vmem:[%s684_s19 + $0x18] sm:$0xff]   ;;  %v578_v30 = vld [vmem:[%s684_s19 + $0x20] sm:$0xff]   ;;  %v579_v31 = vld [vmem:[%s684_s19 + $0x28] sm:$0xff]  }
  0x11   : > { %v521_v10 = vunpack.c.l.bf16 %v576_v3  ;;  %v522_v11 = vunpack.c.h.bf16 %v576_v3  ;;  %v525_v12 = vunpack.c.l.bf16 %v577_v9  ;;  %v526_v13 = vunpack.c.h.bf16 %v577_v9  ;;  %v580_v36 = vld [vmem:[%s684_s19 + $0x30] sm:$0xff]   ;;  %v581_v37 = vld [vmem:[%s684_s19 + $0x38] sm:$0xff]   ;;  %v582_v3 = vld [vmem:[%s684_s19 + $0x40] sm:$0xff]  }
  0x12   : > { %v278_v14 = vmul.f32 %v689_v0, %v513_v4  ;;  %v279_v15 = vmul.f32 %v689_v0, %v514_v6  ;;  %v280_v16 = vmul.f32 %v689_v0, %v517_v7  ;;  %v281_v17 = vmul.f32 %v689_v0, %v518_v8  ;;  %v583_v4 = vld [vmem:[%s684_s19 + $0x48] sm:$0xff]   ;;  %v584_v6 = vld [vmem:[%s684_s19 + $0x50] sm:$0xff]  }
  0x13   : > { %v282_v18 = vmul.f32 %v689_v0, %v521_v10  ;;  %v283_v19 = vmul.f32 %v689_v0, %v522_v11  ;;  %v284_v20 = vmul.f32 %v689_v0, %v525_v12  ;;  %v285_v21 = vmul.f32 %v689_v0, %v526_v13  ;;  %v585_v11 = vld [vmem:[%s684_s19 + $0x58] sm:$0xff]  }
  0x14   : > { %v314_v22 = vadd.f32 %v697_v5, %v278_v14  ;;  %v315_v23 = vadd.f32 %v697_v5, %v279_v15  ;;  %v316_v24 = vadd.f32 %v697_v5, %v280_v16  ;;  %v317_v25 = vadd.f32 %v697_v5, %v281_v17 }
  0x15   : > { %v318_v26 = vadd.f32 %v697_v5, %v282_v18  ;;  %v319_v27 = vadd.f32 %v697_v5, %v283_v19  ;;  %v320_v28 = vadd.f32 %v697_v5, %v284_v20  ;;  %v321_v29 = vadd.f32 %v697_v5, %v285_v21 }
  0x16   : > { %v346_v32 = vmax.f32 %v314_v22, 0.0  ;;  %v347_v33 = vmax.f32 %v315_v23, 0.0  ;;  %v348_v34 = vmax.f32 %v316_v24, 0.0  ;;  %v349_v35 = vmax.f32 %v317_v25, 0.0 }
  0x17   : > { %v350_v38 = vmax.f32 %v318_v26, 0.0  ;;  %v351_v39 = vmax.f32 %v319_v27, 0.0  ;;  %v352_v40 = vmax.f32 %v320_v28, 0.0  ;;  %v353_v41 = vmax.f32 %v321_v29, 0.0 }
  0x18   : > { %379 = vst.msk [vmem:[%s716_s27] sm:$0xff] %vm378_vm0, %v346_v32  ;;  %v529_v42 = vunpack.c.l.bf16 %v578_v30  ;;  %v530_v43 = vunpack.c.h.bf16 %v578_v30  ;;  %v533_v44 = vunpack.c.l.bf16 %v579_v31  ;;  %v534_v45 = vunpack.c.h.bf16 %v579_v31 }
  0x19   : > { %380 = vst.msk [vmem:[%s716_s27 + $0x8] sm:$0xff] %vm378_vm0, %v347_v33  ;;  %v537_v46 = vunpack.c.l.bf16 %v580_v36  ;;  %v538_v47 = vunpack.c.h.bf16 %v580_v36  ;;  %v541_v48 = vunpack.c.l.bf16 %v581_v37  ;;  %v542_v49 = vunpack.c.h.bf16 %v581_v37 }
  0x1a   : > { %381 = vst.msk [vmem:[%s716_s27 + $0x10] sm:$0xff] %vm378_vm0, %v348_v34  ;;  %v286_v50 = vmul.f32 %v689_v0, %v529_v42  ;;  %v287_v51 = vmul.f32 %v689_v0, %v530_v43  ;;  %v288_v52 = vmul.f32 %v689_v0, %v533_v44  ;;  %v289_v53 = vmul.f32 %v689_v0, %v534_v45  ;;  %v588_v42 = vld [vmem:[%s684_s19 + $0x70] sm:$0xff]  }
  0x1b   : > { %382 = vst.msk [vmem:[%s716_s27 + $0x18] sm:$0xff] %vm378_vm0, %v349_v35  ;;  %v290_v54 = vmul.f32 %v689_v0, %v537_v46  ;;  %v291_v55 = vmul.f32 %v689_v0, %v538_v47  ;;  %v292_v56 = vmul.f32 %v689_v0, %v541_v48  ;;  %v293_v57 = vmul.f32 %v689_v0, %v542_v49  ;;  %v589_v47 = vld [vmem:[%s684_s19 + $0x78] sm:$0xff]  }
  0x1c   : > { %383 = vst.msk [vmem:[%s716_s27 + $0x20] sm:$0xff] %vm378_vm0, %v350_v38  ;;  %v322_v58 = vadd.f32 %v697_v5, %v286_v50  ;;  %v323_v59 = vadd.f32 %v697_v5, %v287_v51  ;;  %v324_v60 = vadd.f32 %v697_v5, %v288_v52  ;;  %v325_v61 = vadd.f32 %v697_v5, %v289_v53 }
  0x1d   : > { %384 = vst.msk [vmem:[%s716_s27 + $0x28] sm:$0xff] %vm378_vm0, %v351_v39  ;;  %v326_v62 = vadd.f32 %v697_v5, %v290_v54  ;;  %v327_v63 = vadd.f32 %v697_v5, %v291_v55  ;;  %v328_v1 = vadd.f32 %v697_v5, %v292_v56  ;;  %v329_v2 = vadd.f32 %v697_v5, %v293_v57 }
  0x1e   : > { %385 = vst.msk [vmem:[%s716_s27 + $0x30] sm:$0xff] %vm378_vm0, %v352_v40  ;;  %v354_v7 = vmax.f32 %v322_v58, 0.0  ;;  %v355_v8 = vmax.f32 %v323_v59, 0.0  ;;  %v356_v9 = vmax.f32 %v324_v60, 0.0  ;;  %v357_v10 = vmax.f32 %v325_v61, 0.0  ;;  %v586_v40 = vld [vmem:[%s684_s19 + $0x60] sm:$0xff]  }
  0x1f   : > { %386 = vst.msk [vmem:[%s716_s27 + $0x38] sm:$0xff] %vm378_vm0, %v353_v41  ;;  %v358_v12 = vmax.f32 %v326_v62, 0.0  ;;  %v359_v13 = vmax.f32 %v327_v63, 0.0  ;;  %v360_v14 = vmax.f32 %v328_v1, 0.0  ;;  %v361_v15 = vmax.f32 %v329_v2, 0.0  ;;  %v587_v41 = vld [vmem:[%s684_s19 + $0x68] sm:$0xff]  }
  0x20   : > { %387 = vst.msk [vmem:[%s716_s27 + $0x40] sm:$0xff] %vm378_vm0, %v354_v7  ;;  %v545_v16 = vunpack.c.l.bf16 %v582_v3  ;;  %v546_v17 = vunpack.c.h.bf16 %v582_v3  ;;  %v549_v18 = vunpack.c.l.bf16 %v583_v4  ;;  %v550_v19 = vunpack.c.h.bf16 %v583_v4 }
  0x21   : > { %388 = vst.msk [vmem:[%s716_s27 + $0x48] sm:$0xff] %vm378_vm0, %v355_v8  ;;  %v553_v20 = vunpack.c.l.bf16 %v584_v6  ;;  %v554_v21 = vunpack.c.h.bf16 %v584_v6  ;;  %v557_v22 = vunpack.c.l.bf16 %v585_v11  ;;  %v558_v23 = vunpack.c.h.bf16 %v585_v11 }
  0x22   : > { %389 = vst.msk [vmem:[%s716_s27 + $0x50] sm:$0xff] %vm378_vm0, %v356_v9  ;;  %v294_v24 = vmul.f32 %v689_v0, %v545_v16  ;;  %v295_v25 = vmul.f32 %v689_v0, %v546_v17  ;;  %v296_v26 = vmul.f32 %v689_v0, %v549_v18  ;;  %v297_v27 = vmul.f32 %v689_v0, %v550_v19 }
  0x23   : > { %390 = vst.msk [vmem:[%s716_s27 + $0x58] sm:$0xff] %vm378_vm0, %v357_v10  ;;  %v298_v28 = vmul.f32 %v689_v0, %v553_v20  ;;  %v299_v29 = vmul.f32 %v689_v0, %v554_v21  ;;  %v300_v30 = vmul.f32 %v689_v0, %v557_v22  ;;  %v301_v31 = vmul.f32 %v689_v0, %v558_v23 }
  0x24   : > { %391 = vst.msk [vmem:[%s716_s27 + $0x60] sm:$0xff] %vm378_vm0, %v358_v12  ;;  %v330_v32 = vadd.f32 %v697_v5, %v294_v24  ;;  %v331_v33 = vadd.f32 %v697_v5, %v295_v25  ;;  %v332_v34 = vadd.f32 %v697_v5, %v296_v26  ;;  %v333_v35 = vadd.f32 %v697_v5, %v297_v27 }
  0x25   : > { %392 = vst.msk [vmem:[%s716_s27 + $0x68] sm:$0xff] %vm378_vm0, %v359_v13  ;;  %v334_v36 = vadd.f32 %v697_v5, %v298_v28  ;;  %v335_v37 = vadd.f32 %v697_v5, %v299_v29  ;;  %v336_v38 = vadd.f32 %v697_v5, %v300_v30  ;;  %v337_v39 = vadd.f32 %v697_v5, %v301_v31 }
  0x26   : > { %393 = vst.msk [vmem:[%s716_s27 + $0x70] sm:$0xff] %vm378_vm0, %v360_v14  ;;  %v362_v43 = vmax.f32 %v330_v32, 0.0  ;;  %v363_v44 = vmax.f32 %v331_v33, 0.0  ;;  %v364_v45 = vmax.f32 %v332_v34, 0.0  ;;  %v365_v46 = vmax.f32 %v333_v35, 0.0 }
  0x27   : > { %394 = vst.msk [vmem:[%s716_s27 + $0x78] sm:$0xff] %vm378_vm0, %v361_v15  ;;  %v366_v48 = vmax.f32 %v334_v36, 0.0  ;;  %v367_v49 = vmax.f32 %v335_v37, 0.0  ;;  %v368_v50 = vmax.f32 %v336_v38, 0.0  ;;  %v369_v51 = vmax.f32 %v337_v39, 0.0 }
  0x28   : > { %395 = vst.msk [vmem:[%s716_s27 + $0x80] sm:$0xff] %vm378_vm0, %v362_v43  ;;  %v561_v52 = vunpack.c.l.bf16 %v586_v40  ;;  %v562_v53 = vunpack.c.h.bf16 %v586_v40  ;;  %v565_v54 = vunpack.c.l.bf16 %v587_v41  ;;  %v566_v55 = vunpack.c.h.bf16 %v587_v41 }
  0x29   : > { %396 = vst.msk [vmem:[%s716_s27 + $0x88] sm:$0xff] %vm378_vm0, %v363_v44  ;;  %v569_v56 = vunpack.c.l.bf16 %v588_v42  ;;  %v570_v57 = vunpack.c.h.bf16 %v588_v42  ;;  %v573_v58 = vunpack.c.l.bf16 %v589_v47  ;;  %v574_v59 = vunpack.c.h.bf16 %v589_v47 }
  0x2a   : > { %397 = vst.msk [vmem:[%s716_s27 + $0x90] sm:$0xff] %vm378_vm0, %v364_v45  ;;  %v302_v60 = vmul.f32 %v689_v0, %v561_v52  ;;  %v303_v61 = vmul.f32 %v689_v0, %v562_v53  ;;  %v304_v62 = vmul.f32 %v689_v0, %v565_v54  ;;  %v305_v63 = vmul.f32 %v689_v0, %v566_v55 }
  0x2b   : > { %398 = vst.msk [vmem:[%s716_s27 + $0x98] sm:$0xff] %vm378_vm0, %v365_v46  ;;  %v306_v1 = vmul.f32 %v689_v0, %v569_v56  ;;  %v307_v2 = vmul.f32 %v689_v0, %v570_v57  ;;  %v308_v3 = vmul.f32 %v689_v0, %v573_v58  ;;  %v309_v4 = vmul.f32 %v689_v0, %v574_v59 }
  0x2c   : > { %399 = vst.msk [vmem:[%s716_s27 + $0xa0] sm:$0xff] %vm378_vm0, %v366_v48  ;;  %v338_v6 = vadd.f32 %v697_v5, %v302_v60  ;;  %v339_v7 = vadd.f32 %v697_v5, %v303_v61  ;;  %v340_v8 = vadd.f32 %v697_v5, %v304_v62  ;;  %v341_v9 = vadd.f32 %v697_v5, %v305_v63 }
  0x2d   : > { %400 = vst.msk [vmem:[%s716_s27 + $0xa8] sm:$0xff] %vm378_vm0, %v367_v49  ;;  %v342_v10 = vadd.f32 %v697_v5, %v306_v1  ;;  %v343_v0 = vadd.f32 %v697_v5, %v307_v2  ;;  %v344_v14 = vadd.f32 %v697_v5, %v308_v3  ;;  %v345_v16 = vadd.f32 %v697_v5, %v309_v4 }
  0x2e   : > { %401 = vst.msk [vmem:[%s716_s27 + $0xb0] sm:$0xff] %vm378_vm0, %v368_v50  ;;  %v370_v11 = vmax.f32 %v338_v6, 0.0  ;;  %v371_v12 = vmax.f32 %v339_v7, 0.0  ;;  %v372_v13 = vmax.f32 %v340_v8, 0.0  ;;  %v373_v15 = vmax.f32 %v341_v9, 0.0 }
  0x2f   : > { %402 = vst.msk [vmem:[%s716_s27 + $0xb8] sm:$0xff] %vm378_vm0, %v369_v51  ;;  %v374_v17 = vmax.f32 %v342_v10, 0.0  ;;  %v375_v18 = vmax.f32 %v343_v0, 0.0  ;;  %v376_v19 = vmax.f32 %v344_v14, 0.0  ;;  %v377_v20 = vmax.f32 %v345_v16, 0.0 }
  0x30   : > { %403 = vst.msk [vmem:[%s716_s27 + $0xc0] sm:$0xff] %vm378_vm0, %v370_v11 }
  0x31   : > { %404 = vst.msk [vmem:[%s716_s27 + $0xc8] sm:$0xff] %vm378_vm0, %v371_v12 }
  0x32   : > { %405 = vst.msk [vmem:[%s716_s27 + $0xd0] sm:$0xff] %vm378_vm0, %v372_v13 }
  0x33   : > { %406 = vst.msk [vmem:[%s716_s27 + $0xd8] sm:$0xff] %vm378_vm0, %v373_v15 }
  0x34   : > { %407 = vst.msk [vmem:[%s716_s27 + $0xe0] sm:$0xff] %vm378_vm0, %v374_v17 }
  0x35   : > { %408 = vst.msk [vmem:[%s716_s27 + $0xe8] sm:$0xff] %vm378_vm0, %v375_v18 }
  0x36   : > { %409 = vst.msk [vmem:[%s716_s27 + $0xf0] sm:$0xff] %vm378_vm0, %v376_v19 }
  0x37   : > { %410 = vst.msk [vmem:[%s716_s27 + $0xf8] sm:$0xff] %vm378_vm0, %v377_v20 }
  0x38 PF: > { %s13_s14 = sadd.s32 1, %s638_s14   ;;  %s859_s12 = smov %s634_s13 }
  0x39   : > { %p10_p5 = scmp.ge.s32.totalorder %s13_s14, 4   ;;  %s860_s13 = smov %s862_s15 }
  0x3b   :  { %12 = sbr.rel (!%p10_p5) target bundleno = 2 (0x2), region = 62 }

// kernel: downconv_block.2
= control target key start
LH: loop header
LB: loop body
LE: loop exit
PB: predicated region body
PF: predicated region fallthrough
CT: control target
= control target key end

     0   :  { %s1159_s18 = smov 0   ;;  %s1161_s19 = smov 0   ;;  %s1606_s0 = inlined_call_operand.vmem [shape: bf16[2,256,36], index: 0, kind: input, shape index: {}]   ;;  %s1607_s1 = inlined_call_operand.vmem [shape: bf16[36,8], index: 1, kind: input, shape index: {}]   ;;  %s1608_s2 = inlined_call_operand.vmem [shape: f32[1,8], index: 2, kind: input, shape index: {}]   ;;  %s1609_s3 = inlined_call_operand.vmem [shape: bf16[2,256,8], index: 3, kind: output, shape index: {0}]   ;;  %s1610_s4 = inlined_call_operand.vmem [shape: f32[2,1,8], index: 4, kind: output, shape index: {1}]   ;;  %s1611_s5 = inlined_call_operand.vmem [shape: f32[2,1,8], index: 5, kind: output, shape index: {2}]  }
   0x1   :  { %s1163_s20 = smov 0  }
   0x2 LB: > { %s28_s21 = sadd.s32 1, %s1123_s19  ;;  %p956_p0 = scmp.ge.s32.totalorder %s1127_s20, 1  ;;  %s1127_s20 = sphi %s1163_s20, %s16_s20   ;;  %s1123_s19 = sphi %s1161_s19, %s1613_s19   ;;  %s1119_s18 = sphi %s1159_s18, %s1612_s18  }
   0x3   : > { %p30_p1 = scmp.ge.s32.totalorder %s28_s21, 2  ;;  %p217_p2 = scmp.lt.s32.totalorder %s1127_s20, 3 }
   0x5   : > { %s1615_s21 = smov (%p30_p1, %s28_s21), 0  ;;  %p218_p3 = pnand %p956_p0, %p217_p2 }
   0x6   : > { %p262_p4 = scmp.lt.s32.totalorder (!%p218_p3), %s1119_s18, 1 }
   0x7   : > { %221 = sbr.rel (%p218_p3) target bundleno = 279 (0x117), region = 32 }
   0xc   : > { %v328_v0 = vld [vmem:[%s1607_s1 + $0x10] sm:$0x3]  ;;  %vm477_vm0 = vcmask 1041408   ;;  %s1617_s18 = smov (!%p262_p4, %s1119_s18), 1  ;;  %v1070_v4 = vld [vmem:[%s1607_s1 + $0x8] sm:$0xff]  ;;  %v1069_v5 = vld [vmem:[%s1607_s1] sm:$0xff] }
   0xd   : > { %v422_v1 = vunpack.c.l.b16 %v328_v0  ;;  %s1051_s26 = sshll.u32 %s1617_s18, 7  ;;  %vm428_vm1 = vcmask 293888   ;;  %v1231_v22 = vld [vmem:[%s1608_s2] ss:$0 sm:$0xff]  ;;  %vm602_vm2 = vcmask 60416   ;;  %vm635_vm3 = vcmask 64512   ;;  %s284_s14 = scalar_lea.vmem %s1610_s4, %s1617_s18 }
   0xe   : > { %s1194_s6 = scalar_lea.vmem %s1606_s0, %s1051_s26  ;;  %s1244_s11 = scalar_lea.vmem %s1609_s3, %s1051_s26  ;;  %vm705_vm4 = vcmask 57344  }
   0xf   : > { %v425_v2 = vpack.c.b16 %v422_v1, %v422_v1  ;;  %v1053_v6 = vld [vmem:[%s1194_s6] sm:$0xff]  ;;  %v1054_v10 = vld [vmem:[%s1194_s6 + $0x8] sm:$0xff]  ;;  %v1055_v14 = vld [vmem:[%s1194_s6 + $0x10] sm:$0xff]  ;;  %s289_s17 = scalar_lea.vmem %s1611_s5, %s1617_s18 }
  0x10   : > { %v1057_v7 = vld [vmem:[%s1194_s6 + $0x20] sm:$0xff]  ;;  %v1058_v11 = vld [vmem:[%s1194_s6 + $0x28] sm:$0xff]  ;;  %v1059_v15 = vld [vmem:[%s1194_s6 + $0x30] sm:$0xff] }
  0x11   : > { %v479_v3 = vsel %vm477_vm0, %v425_v2, 0  ;;  %v1061_v8 = vld [vmem:[%s1194_s6 + $0x40] sm:$0xff]  ;;  %v1062_v12 = vld [vmem:[%s1194_s6 + $0x48] sm:$0xff]  ;;  %v1063_v16 = vld [vmem:[%s1194_s6 + $0x50] sm:$0xff] }
  0x12   : > { %486 = vmatpush.bf16.msra.mxu0 %v479_v3  ;;  %1071 = vmatpush.bf16.msra.mxu1 %v479_v3  ;;  %v1065_v9 = vld [vmem:[%s1194_s6 + $0x60] sm:$0xff]  ;;  %v1066_v13 = vld [vmem:[%s1194_s6 + $0x68] sm:$0xff]  ;;  %v1067_v17 = vld [vmem:[%s1194_s6 + $0x70] sm:$0xff] }
  0x13   : > { %1072 = vmatpush.bf16.msra.mxu2 %v479_v3  ;;  %1073 = vmatpush.bf16.msra.mxu3 %v479_v3  ;;  %v1056_v18 = vld [vmem:[%s1194_s6 + $0x18] sm:$0xff] }
  0x14   : > { %v1060_v19 = vld [vmem:[%s1194_s6 + $0x38] sm:$0xff] }
  0x15   : > { %v1064_v20 = vld [vmem:[%s1194_s6 + $0x58] sm:$0xff] }
  0x16   : > { %487 = vmatpush.bf16.msra.mxu0 %v1070_v4  ;;  %1074 = vmatpush.bf16.msra.mxu1 %v1070_v4  ;;  %v1068_v21 = vld [vmem:[%s1194_s6 + $0x78] sm:$0xff] }
  0x17   : > { %1075 = vmatpush.bf16.msra.mxu2 %v1070_v4  ;;  %1076 = vmatpush.bf16.msra.mxu3 %v1070_v4 }
  0x1a   : > { %488 = vmatpush.bf16.msra.mxu0 %v1069_v5  ;;  %1077 = vmatpush.bf16.msra.mxu1 %v1069_v5 }
  0x1b   : > { %1078 = vmatpush.bf16.msra.mxu2 %v1069_v5  ;;  %1079 = vmatpush.bf16.msra.mxu3 %v1069_v5 }
  0x1d   : > { %1033 = vmatmul.msk.bf16.vlgmr.msra.gmra.mxu0 %vm428_vm1, %v1053_v6  ;;  %1037 = vmatmul.msk.bf16.vlgmr.msra.gmra.mxu1 %vm428_vm1, %v1057_v7 }
  0x1e   : > { %1041 = vmatmul.msk.bf16.vlgmr.msra.gmra.mxu2 %vm428_vm1, %v1061_v8  ;;  %1045 = vmatmul.msk.bf16.vlgmr.msra.gmra.mxu3 %vm428_vm1, %v1065_v9 }
  0x2d   : > { %1034 = vmatmul.msk.bf16.gmra.mxu0 %vm428_vm1, %v1054_v10  ;;  %1038 = vmatmul.msk.bf16.gmra.mxu1 %vm428_vm1, %v1058_v11 }
  0x2e   : > { %1042 = vmatmul.msk.bf16.gmra.mxu2 %vm428_vm1, %v1062_v12  ;;  %1046 = vmatmul.msk.bf16.gmra.mxu3 %vm428_vm1, %v1066_v13 }
  0x3d   : > { %1035 = vmatmul.msk.bf16.gmra.mxu0 %vm428_vm1, %v1055_v14  ;;  %1039 = vmatmul.msk.bf16.gmra.mxu1 %vm428_vm1, %v1059_v15 }
  0x3e   : > { %1043 = vmatmul.msk.bf16.gmra.mxu2 %vm428_vm1, %v1063_v16  ;;  %1047 = vmatmul.msk.bf16.gmra.mxu3 %vm428_vm1, %v1067_v17 }
  0x4d   : > { %1036 = vmatmul.msk.bf16.gmra.mxu0 %vm428_vm1, %v1056_v18  ;;  %1040 = vmatmul.msk.bf16.gmra.mxu1 %vm428_vm1, %v1060_v19 }
  0x4e   : > { %1044 = vmatmul.msk.bf16.gmra.mxu2 %vm428_vm1, %v1064_v20  ;;  %1048 = vmatmul.msk.bf16.gmra.mxu3 %vm428_vm1, %v1068_v21 }
  0x9a   : > { %v490_v23 = vpop.f32.mrf.mxu0  ;;  %v510_v24 = vpop.f32.mrf.mxu1 }
  0x9b   : > { %v1234_v25 = vadd.f32 %v1231_v22, %v490_v23  ;;  %v1237_v26 = vadd.f32 %v1231_v22, %v510_v24 }
  0x9d   : > { %v570_v27 = vpack.c.bf16 %v1234_v25, %v1234_v25  ;;  %v578_v28 = vpack.c.bf16 %v1237_v26, %v1237_v26  ;;  %v707_v23 = vmul.f32 %v1234_v25, %v1234_v25 }
  0x9f   : > { %603 = vst.msk [vmem:[%s1244_s11] sm:$0xf] %vm602_vm2, %v570_v27 }
  0xa0   : > { %611 = vst.msk [vmem:[%s1244_s11 + $0x20] sm:$0xf] %vm602_vm2, %v578_v28 }
  0xa1   : > { %v530_v29 = vpop.f32.mrf.mxu2  ;;  %v550_v35 = vpop.f32.mrf.mxu3 }
  0xa2   : > { %v492_v30 = vpop.f32.mrf.mxu0  ;;  %v512_v31 = vpop.f32.mrf.mxu1  ;;  %v1255_v32 = vadd.f32 %v1231_v22, %v530_v29  ;;  %v1276_v39 = vadd.f32 %v1231_v22, %v550_v35 }
  0xa3   : > { %v1258_v33 = vadd.f32 %v1231_v22, %v492_v30  ;;  %v1261_v34 = vadd.f32 %v1231_v22, %v512_v31  ;;  %v636_v31 = vsel %vm635_vm3, %v1234_v25, 0.0 }
  0xa4   : > { %v586_v36 = vpack.c.bf16 %v1255_v32, %v1255_v32  ;;  %v594_v44 = vpack.c.bf16 %v1276_v39, %v1276_v39 }
  0xa5   : > { %v571_v37 = vpack.c.bf16 %v1258_v33, %v1258_v33  ;;  %v579_v38 = vpack.c.bf16 %v1261_v34, %v1261_v34  ;;  %v708_v17 = vmul.f32 %v1258_v33, %v1258_v33  ;;  %v637_v28 = vsel %vm635_vm3, %v1258_v33, 0.0 }
  0xa6   : > { %619 = vst.msk [vmem:[%s1244_s11 + $0x40] sm:$0xf] %vm602_vm2, %v586_v36  ;;  %v739_v36 = vsel %vm635_vm3, %v707_v23, 0.0 }
  0xa7   : > { %604 = vst.msk [vmem:[%s1244_s11 + $0x4] sm:$0xf] %vm602_vm2, %v571_v37  ;;  %v740_v30 = vsel %vm635_vm3, %v708_v17, 0.0  ;;  %v638_v37 = vadd.f32 %v637_v28, %v636_v31 }
  0xa8   : > { %612 = vst.msk [vmem:[%s1244_s11 + $0x24] sm:$0xf] %vm602_vm2, %v579_v38 }
  0xa9   : > { %v532_v40 = vpop.f32.mrf.mxu2  ;;  %v552_v47 = vpop.f32.mrf.mxu3  ;;  %627 = vst.msk [vmem:[%s1244_s11 + $0x60] sm:$0xf] %vm602_vm2, %v594_v44 }
  0xaa   : > { %v495_v41 = vpop.f32.mrf.mxu0  ;;  %v515_v42 = vpop.f32.mrf.mxu1  ;;  %v1279_v43 = vadd.f32 %v1231_v22, %v532_v40  ;;  %v1302_v51 = vadd.f32 %v1231_v22, %v552_v47  ;;  %v741_v40 = vadd.f32 %v740_v30, %v739_v36 }
  0xab   : > { %v1284_v45 = vadd.f32 %v1231_v22, %v495_v41  ;;  %v1287_v46 = vadd.f32 %v1231_v22, %v515_v42 }
  0xac   : > { %v587_v48 = vpack.c.bf16 %v1279_v43, %v1279_v43  ;;  %v595_v53 = vpack.c.bf16 %v1302_v51, %v1302_v51 }
  0xad   : > { %v572_v49 = vpack.c.bf16 %v1284_v45, %v1284_v45  ;;  %v580_v50 = vpack.c.bf16 %v1287_v46, %v1287_v46  ;;  %v709_v29 = vmul.f32 %v1284_v45, %v1284_v45  ;;  %v639_v33 = vsel %vm635_vm3, %v1284_v45, 0.0 }
  0xae   : > { %620 = vst.msk [vmem:[%s1244_s11 + $0x44] sm:$0xf] %vm602_vm2, %v587_v48 }
  0xaf   : > { %605 = vst.msk [vmem:[%s1244_s11 + $0x8] sm:$0xf] %vm602_vm2, %v572_v49  ;;  %v742_v41 = vsel %vm635_vm3, %v709_v29, 0.0  ;;  %v715_v29 = vmul.f32 %v1237_v26, %v1237_v26 }
  0xb0   : > { %613 = vst.msk [vmem:[%s1244_s11 + $0x28] sm:$0xf] %vm602_vm2, %v580_v50 }
  0xb1   : > { %v535_v52 = vpop.f32.mrf.mxu2  ;;  %628 = vst.msk [vmem:[%s1244_s11 + $0x64] sm:$0xf] %vm602_vm2, %v595_v53  ;;  %v555_v59 = vpop.f32.mrf.mxu3  ;;  %v640_v53 = vadd.f32 %v639_v33, %v638_v37 }
  0xb2   : > { %v497_v54 = vpop.f32.mrf.mxu0  ;;  %v517_v55 = vpop.f32.mrf.mxu1  ;;  %v1309_v56 = vadd.f32 %v1231_v22, %v535_v52  ;;  %v1335_v5 = vadd.f32 %v1231_v22, %v555_v59 }
  0xb3   : > { %v498_v57 = vadd.f32 %v1231_v22, %v497_v54  ;;  %v1313_v58 = vadd.f32 %v1231_v22, %v517_v55 }
  0xb4   : > { %v588_v60 = vpack.c.bf16 %v1309_v56, %v1309_v56  ;;  %v596_v11 = vpack.c.bf16 %v1335_v5, %v1335_v5 }
  0xb5   : > { %v573_v61 = vpack.c.bf16 %v498_v57, %v498_v57  ;;  %v581_v62 = vpack.c.bf16 %v1313_v58, %v1313_v58  ;;  %v710_v35 = vmul.f32 %v498_v57, %v498_v57  ;;  %v641_v42 = vsel %vm635_vm3, %v498_v57, 0.0 }
  0xb6   : > { %621 = vst.msk [vmem:[%s1244_s11 + $0x48] sm:$0xf] %vm602_vm2, %v588_v60 }
  0xb7   : > { %606 = vst.msk [vmem:[%s1244_s11 + $0xc] sm:$0xf] %vm602_vm2, %v573_v61  ;;  %v744_v54 = vsel %vm635_vm3, %v710_v35, 0.0 }
  0xb8   : > { %614 = vst.msk [vmem:[%s1244_s11 + $0x2c] sm:$0xf] %vm602_vm2, %v581_v62 }
  0xb9   : > { %v537_v63 = vpop.f32.mrf.mxu2  ;;  %v557_v6 = vpop.f32.mrf.mxu3  ;;  %629 = vst.msk [vmem:[%s1244_s11 + $0x68] sm:$0xf] %vm602_vm2, %v596_v11 }
  0xba   : > { %v500_v0 = vpop.f32.mrf.mxu0  ;;  %v520_v1 = vpop.f32.mrf.mxu1  ;;  %v1328_v2 = vadd.f32 %v1231_v22, %v537_v63  ;;  %v1340_v8 = vadd.f32 %v1231_v22, %v557_v6  ;;  %v743_v63 = vadd.f32 %v742_v41, %v741_v40 }
  0xbb   : > { %v501_v3 = vadd.f32 %v1231_v22, %v500_v0  ;;  %v1332_v4 = vadd.f32 %v1231_v22, %v520_v1  ;;  %v642_v0 = vadd.f32 %v641_v42, %v640_v53  ;;  %v651_v42 = vsel %vm635_vm3, %v1237_v26, 0.0 }
  0xbc   : > { %v589_v7 = vpack.c.bf16 %v1328_v2, %v1328_v2  ;;  %v597_v12 = vpack.c.bf16 %v1340_v8, %v1340_v8  ;;  %v653_v53 = vsel %vm635_vm3, %v1261_v34, 0.0 }
  0xbd   : > { %v574_v9 = vpack.c.bf16 %v501_v3, %v501_v3  ;;  %v582_v10 = vpack.c.bf16 %v1332_v4, %v1332_v4  ;;  %v711_v25 = vmul.f32 %v501_v3, %v501_v3  ;;  %v643_v59 = vsel %vm635_vm3, %v501_v3, 0.0 }
  0xbe   : > { %622 = vst.msk [vmem:[%s1244_s11 + $0x4c] sm:$0xf] %vm602_vm2, %v589_v7 }
  0xbf   : > { %607 = vst.msk [vmem:[%s1244_s11 + $0x10] sm:$0xf] %vm602_vm2, %v574_v9  ;;  %v746_v1 = vsel %vm635_vm3, %v711_v25, 0.0  ;;  %v745_v9 = vadd.f32 %v744_v54, %v743_v63  ;;  %v717_v54 = vmul.f32 %v1287_v46, %v1287_v46  ;;  %v718_v63 = vmul.f32 %v1313_v58, %v1313_v58 }
  0xc0   : > { %615 = vst.msk [vmem:[%s1244_s11 + $0x30] sm:$0xf] %vm602_vm2, %v582_v10  ;;  %v644_v10 = vadd.f32 %v643_v59, %v642_v0 }
  0xc1   : > { %v540_v13 = vpop.f32.mrf.mxu2  ;;  %630 = vst.msk [vmem:[%s1244_s11 + $0x6c] sm:$0xf] %vm602_vm2, %v597_v12  ;;  %v560_v20 = vpop.f32.mrf.mxu3 }
  0xc2   : > { %v502_v14 = vpop.f32.mrf.mxu0  ;;  %v522_v15 = vpop.f32.mrf.mxu1  ;;  %v1357_v16 = vadd.f32 %v1231_v22, %v540_v13  ;;  %v1399_v45 = vadd.f32 %v1231_v22, %v560_v20 }
  0xc3   : > { %v503_v18 = vadd.f32 %v1231_v22, %v502_v14  ;;  %v1365_v19 = vadd.f32 %v1231_v22, %v522_v15  ;;  %v747_v15 = vadd.f32 %v746_v1, %v745_v9  ;;  %v657_v9 = vsel %vm635_vm3, %v1313_v58, 0.0 }
  0xc4   : > { %v590_v21 = vpack.c.bf16 %v1357_v16, %v1357_v16  ;;  %v598_v3 = vpack.c.bf16 %v1399_v45, %v1399_v45 }
  0xc5   : > { %v575_v24 = vpack.c.bf16 %v503_v18, %v503_v18  ;;  %v583_v27 = vpack.c.bf16 %v1365_v19, %v1365_v19  ;;  %v712_v60 = vmul.f32 %v503_v18, %v503_v18  ;;  %v645_v6 = vsel %vm635_vm3, %v503_v18, 0.0 }
  0xc6   : > { %623 = vst.msk [vmem:[%s1244_s11 + $0x50] sm:$0xf] %vm602_vm2, %v590_v21  ;;  %v646_v17 = vadd.f32 %v645_v6, %v644_v10  ;;  %v720_v58 = vmul.f32 %v1365_v19, %v1365_v19 }
  0xc7   : > { %608 = vst.msk [vmem:[%s1244_s11 + $0x14] sm:$0xf] %vm602_vm2, %v575_v24  ;;  %v748_v12 = vsel %vm635_vm3, %v712_v60, 0.0 }
  0xc8   : > { %616 = vst.msk [vmem:[%s1244_s11 + $0x34] sm:$0xf] %vm602_vm2, %v583_v27  ;;  %v749_v30 = vadd.f32 %v748_v12, %v747_v15  ;;  %v659_v15 = vsel %vm635_vm3, %v1332_v4, 0.0 }
  0xc9   : > { %v542_v38 = vpop.f32.mrf.mxu2  ;;  %v562_v52 = vpop.f32.mrf.mxu3  ;;  %631 = vst.msk [vmem:[%s1244_s11 + $0x70] sm:$0xf] %vm602_vm2, %v598_v3  ;;  %v758_v3 = vsel %vm635_vm3, %v717_v54, 0.0 }
  0xca   : > { %v505_v44 = vpop.f32.mrf.mxu0  ;;  %v525_v47 = vpop.f32.mrf.mxu1  ;;  %v1392_v48 = vadd.f32 %v1231_v22, %v542_v38  ;;  %v1405_v57 = vadd.f32 %v1231_v22, %v562_v52  ;;  %v754_v52 = vsel %vm635_vm3, %v715_v29, 0.0  ;;  %v764_v29 = vsel %vm635_vm3, %v720_v58, 0.0 }
  0xcb   : > { %v506_v49 = vadd.f32 %v1231_v22, %v505_v44  ;;  %v1396_v50 = vadd.f32 %v1231_v22, %v525_v47  ;;  %v716_v44 = vmul.f32 %v1261_v34, %v1261_v34 }
  0xcc   : > { %v591_v55 = vpack.c.bf16 %v1392_v48, %v1392_v48  ;;  %v599_v11 = vpack.c.bf16 %v1405_v57, %v1405_v57 }
  0xcd   : > { %v576_v61 = vpack.c.bf16 %v506_v49, %v506_v49  ;;  %v584_v62 = vpack.c.bf16 %v1396_v50, %v1396_v50  ;;  %v713_v7 = vmul.f32 %v506_v49, %v506_v49  ;;  %v647_v13 = vsel %vm635_vm3, %v506_v49, 0.0 }
  0xce   : > { %624 = vst.msk [vmem:[%s1244_s11 + $0x54] sm:$0xf] %vm602_vm2, %v591_v55  ;;  %v648_v31 = vadd.f32 %v647_v13, %v646_v17 }
  0xcf   : > { %609 = vst.msk [vmem:[%s1244_s11 + $0x18] sm:$0xf] %vm602_vm2, %v576_v61  ;;  %v750_v23 = vsel %vm635_vm3, %v713_v7, 0.0  ;;  %v756_v61 = vsel %vm635_vm3, %v716_v44, 0.0 }
  0xd0   : > { %617 = vst.msk [vmem:[%s1244_s11 + $0x38] sm:$0xf] %vm602_vm2, %v584_v62  ;;  %v751_v40 = vadd.f32 %v750_v23, %v749_v30  ;;  %v655_v62 = vsel %vm635_vm3, %v1287_v46, 0.0  ;;  %v719_v46 = vmul.f32 %v1332_v4, %v1332_v4  ;;  %v663_v30 = vsel %vm635_vm3, %v1396_v50, 0.0 }
  0xd1   : > { %v545_v14 = vpop.f32.mrf.mxu2  ;;  %632 = vst.msk [vmem:[%s1244_s11 + $0x74] sm:$0xf] %vm602_vm2, %v599_v11  ;;  %v565_v28 = vpop.f32.mrf.mxu3 }
  0xd2   : > { %v507_v18 = vpop.f32.mrf.mxu0  ;;  %v527_v20 = vpop.f32.mrf.mxu1  ;;  %v1427_v21 = vadd.f32 %v1231_v22, %v545_v14  ;;  %v1468_v34 = vadd.f32 %v1231_v22, %v565_v28  ;;  %v760_v14 = vsel %vm635_vm3, %v718_v63, 0.0  ;;  %v762_v23 = vsel %vm635_vm3, %v719_v46, 0.0 }
  0xd3   : > { %v508_v24 = vadd.f32 %v1231_v22, %v507_v18  ;;  %v1434_v27 = vadd.f32 %v1231_v22, %v527_v20 }
  0xd4   : > { %v592_v35 = vpack.c.bf16 %v1427_v21, %v1427_v21  ;;  %v600_v10 = vpack.c.bf16 %v1468_v34, %v1468_v34  ;;  %v729_v46 = vmul.f32 %v1427_v21, %v1427_v21 }
  0xd5   : > { %v577_v36 = vpack.c.bf16 %v508_v24, %v508_v24  ;;  %v649_v37 = vsel %vm635_vm3, %v508_v24, 0.0  ;;  %v714_v33 = vmul.f32 %v508_v24, %v508_v24  ;;  %v585_v38 = vpack.c.bf16 %v1434_v27, %v1434_v27 }
  0xd6   : > { %v650_v41 = vadd.f32 %v649_v37, %v648_v31  ;;  %625 = vst.msk [vmem:[%s1244_s11 + $0x58] sm:$0xf] %vm602_vm2, %v592_v35  ;;  %v721_v24 = vmul.f32 %v1396_v50, %v1396_v50  ;;  %v722_v31 = vmul.f32 %v1434_v27, %v1434_v27  ;;  %v724_v50 = vmul.f32 %v1279_v43, %v1279_v43 }
  0xd7   : > { %610 = vst.msk [vmem:[%s1244_s11 + $0x1c] sm:$0xf] %vm602_vm2, %v577_v36  ;;  %v752_v47 = vsel %vm635_vm3, %v714_v33, 0.0  ;;  %v665_v33 = vsel %vm635_vm3, %v1434_v27, 0.0  ;;  %v725_v27 = vmul.f32 %v1309_v56, %v1309_v56 }
  0xd8   : > { %v652_v25 = vadd.f32 %v651_v42, %v650_v41  ;;  %v753_v49 = vadd.f32 %v752_v47, %v751_v40  ;;  %618 = vst.msk [vmem:[%s1244_s11 + $0x3c] sm:$0xf] %vm602_vm2, %v585_v38  ;;  %v766_v37 = vsel %vm635_vm3, %v721_v24, 0.0  ;;  %v667_v41 = vsel %vm635_vm3, %v1255_v32, 0.0 }
  0xd9   : > { %v547_v26 = vpop.f32.mrf.mxu2  ;;  %v567_v0 = vpop.f32.mrf.mxu3  ;;  %633 = vst.msk [vmem:[%s1244_s11 + $0x78] sm:$0xf] %vm602_vm2, %v600_v10  ;;  %v768_v42 = vsel %vm635_vm3, %v722_v31, 0.0  ;;  %v772_v54 = vsel %vm635_vm3, %v724_v50, 0.0 }
  0xda   : > { %v654_v55 = vadd.f32 %v653_v53, %v652_v25  ;;  %v755_v59 = vadd.f32 %v754_v52, %v753_v49  ;;  %v1460_v60 = vadd.f32 %v1231_v22, %v547_v26  ;;  %v1482_v13 = vadd.f32 %v1231_v22, %v567_v0 }
  0xdb   : > { %v661_v22 = vsel %vm635_vm3, %v1365_v19, 0.0  ;;  %v723_v19 = vmul.f32 %v1255_v32, %v1255_v32  ;;  %v669_v49 = vsel %vm635_vm3, %v1279_v43, 0.0  ;;  %v671_v32 = vsel %vm635_vm3, %v1309_v56, 0.0 }
  0xdc   : > { %v656_v1 = vadd.f32 %v655_v62, %v654_v55  ;;  %v757_v6 = vadd.f32 %v756_v61, %v755_v59  ;;  %v593_v7 = vpack.c.bf16 %v1460_v60, %v1460_v60  ;;  %v601_v20 = vpack.c.bf16 %v1482_v13, %v1482_v13 }
  0xdd   : > { %v770_v25 = vsel %vm635_vm3, %v723_v19, 0.0  ;;  %v726_v26 = vmul.f32 %v1328_v2, %v1328_v2  ;;  %v774_v61 = vsel %vm635_vm3, %v725_v27, 0.0  ;;  %v673_v43 = vsel %vm635_vm3, %v1328_v2, 0.0 }
  0xde   : > { %v759_v11 = vadd.f32 %v758_v3, %v757_v6  ;;  %v658_v12 = vadd.f32 %v657_v9, %v656_v1  ;;  %626 = vst.msk [vmem:[%s1244_s11 + $0x5c] sm:$0xf] %vm602_vm2, %v593_v7  ;;  %v727_v62 = vmul.f32 %v1357_v16, %v1357_v16  ;;  %v675_v56 = vsel %vm635_vm3, %v1357_v16, 0.0 }
  0xdf   : > { %634 = vst.msk [vmem:[%s1244_s11 + $0x7c] sm:$0xf] %vm602_vm2, %v601_v20  ;;  %v776_v1 = vsel %vm635_vm3, %v726_v26, 0.0  ;;  %v728_v6 = vmul.f32 %v1392_v48, %v1392_v48  ;;  %v677_v2 = vsel %vm635_vm3, %v1392_v48, 0.0  ;;  %v679_v16 = vsel %vm635_vm3, %v1427_v21, 0.0 }
  0xe0   : > { %v660_v17 = vadd.f32 %v659_v15, %v658_v12  ;;  %v761_v18 = vadd.f32 %v760_v14, %v759_v11  ;;  %v778_v9 = vsel %vm635_vm3, %v727_v62, 0.0  ;;  %v730_v14 = vmul.f32 %v1460_v60, %v1460_v60 }
  0xe1   : > { %v780_v12 = vsel %vm635_vm3, %v728_v6, 0.0  ;;  %v782_v48 = vsel %vm635_vm3, %v729_v46, 0.0  ;;  %v732_v21 = vmul.f32 %v1302_v51, %v1302_v51  ;;  %v734_v19 = vmul.f32 %v1340_v8, %v1340_v8 }
  0xe2   : > { %v662_v28 = vadd.f32 %v661_v22, %v660_v17  ;;  %v763_v4 = vadd.f32 %v762_v23, %v761_v18  ;;  %v731_v17 = vmul.f32 %v1276_v39, %v1276_v39  ;;  %v681_v18 = vsel %vm635_vm3, %v1460_v60, 0.0 }
  0xe3   : > { %v683_v22 = vsel %vm635_vm3, %v1276_v39, 0.0  ;;  %v784_v24 = vsel %vm635_vm3, %v730_v14, 0.0  ;;  %v733_v60 = vmul.f32 %v1335_v5, %v1335_v5  ;;  %v687_v39 = vsel %vm635_vm3, %v1335_v5, 0.0 }
  0xe4   : > { %v664_v35 = vadd.f32 %v663_v30, %v662_v28  ;;  %v765_v36 = vadd.f32 %v764_v29, %v763_v4  ;;  %v786_v29 = vsel %vm635_vm3, %v731_v17, 0.0  ;;  %v685_v30 = vsel %vm635_vm3, %v1302_v51, 0.0 }
  0xe5   : > { %v689_v51 = vsel %vm635_vm3, %v1340_v8, 0.0  ;;  %v691_v5 = vsel %vm635_vm3, %v1399_v45, 0.0  ;;  %v693_v8 = vsel %vm635_vm3, %v1405_v57, 0.0  ;;  %v737_v27 = vmul.f32 %v1468_v34, %v1468_v34 }
  0xe6   : > { %v767_v38 = vadd.f32 %v766_v37, %v765_v36  ;;  %v666_v40 = vadd.f32 %v665_v33, %v664_v35  ;;  %v788_v36 = vsel %vm635_vm3, %v732_v21, 0.0 }
  0xe8   : > { %v668_v44 = vadd.f32 %v667_v41, %v666_v40  ;;  %v769_v47 = vadd.f32 %v768_v42, %v767_v38  ;;  %v790_v38 = vsel %vm635_vm3, %v733_v60, 0.0  ;;  %v735_v40 = vmul.f32 %v1399_v45, %v1399_v45 }
  0xe9   : > { %v792_v42 = vsel %vm635_vm3, %v734_v19, 0.0  ;;  %v695_v45 = vsel %vm635_vm3, %v1468_v34, 0.0 }
  0xea   : > { %v670_v52 = vadd.f32 %v669_v49, %v668_v44  ;;  %v771_v53 = vadd.f32 %v770_v25, %v769_v47  ;;  %v736_v44 = vmul.f32 %v1405_v57, %v1405_v57  ;;  %v794_v49 = vsel %vm635_vm3, %v735_v40, 0.0 }
  0xeb   : > { %v697_v57 = vsel %vm635_vm3, %v1482_v13, 0.0 }
  0xec   : > { %v773_v55 = vadd.f32 %v772_v54, %v771_v53  ;;  %v672_v59 = vadd.f32 %v671_v32, %v670_v52  ;;  %v796_v54 = vsel %vm635_vm3, %v736_v44, 0.0  ;;  %v738_v32 = vmul.f32 %v1482_v13, %v1482_v13 }
  0xee   : > { %v674_v63 = vadd.f32 %v673_v43, %v672_v59  ;;  %v775_v0 = vadd.f32 %v774_v61, %v773_v55  ;;  %v798_v59 = vsel %vm635_vm3, %v737_v27, 0.0  ;;  %v800_v62 = vsel %vm635_vm3, %v738_v32, 0.0 }
  0xf0   : > { %v676_v7 = vadd.f32 %v675_v56, %v674_v63  ;;  %v777_v3 = vadd.f32 %v776_v1, %v775_v0 }
  0xf2   : > { %v678_v10 = vadd.f32 %v677_v2, %v676_v7  ;;  %v779_v11 = vadd.f32 %v778_v9, %v777_v3 }
  0xf4   : > { %v781_v15 = vadd.f32 %v780_v12, %v779_v11  ;;  %v680_v58 = vadd.f32 %v679_v16, %v678_v10 }
  0xf6   : > { %v783_v20 = vadd.f32 %v782_v48, %v781_v15  ;;  %v682_v23 = vadd.f32 %v681_v18, %v680_v58 }
  0xf8   : > { %v684_v28 = vadd.f32 %v683_v22, %v682_v23  ;;  %v785_v4 = vadd.f32 %v784_v24, %v783_v20 }
  0xfa   : > { %v686_v31 = vadd.f32 %v685_v30, %v684_v28  ;;  %v787_v35 = vadd.f32 %v786_v29, %v785_v4 }
  0xfc   : > { %v789_v37 = vadd.f32 %v788_v36, %v787_v35  ;;  %v688_v33 = vadd.f32 %v687_v39, %v686_v31 }
  0xfe   : > { %v690_v41 = vadd.f32 %v689_v51, %v688_v33  ;;  %v791_v50 = vadd.f32 %v790_v38, %v789_v37 }
 0x100   : > { %v692_v47 = vadd.f32 %v691_v5, %v690_v41  ;;  %v793_v25 = vadd.f32 %v792_v42, %v791_v50 }
 0x102   : > { %v694_v52 = vadd.f32 %v693_v8, %v692_v47  ;;  %v795_v53 = vadd.f32 %v794_v49, %v793_v25 }
 0x104   : > { %v797_v26 = vadd.f32 %v796_v54, %v795_v53  ;;  %v696_v55 = vadd.f32 %v695_v45, %v694_v52 }
 0x106   : > { %v799_v61 = vadd.f32 %v798_v59, %v797_v26  ;;  %v698_v43 = vadd.f32 %v697_v57, %v696_v55 }
 0x108   : > { %v699_v63 = vrot.slane %v698_v43, 4  ;;  %v801_v0 = vadd.f32 %v800_v62, %v799_v61 }
 0x10a   : > { %v700_v1 = vadd.f32 %v699_v63, %v698_v43  ;;  %v802_v34 = vrot.slane %v801_v0, 4 }
 0x10c   : > { %v701_v56 = vrot.slane %v700_v1, 2  ;;  %v803_v6 = vadd.f32 %v802_v34, %v801_v0 }
 0x10e   : > { %v702_v7 = vadd.f32 %v701_v56, %v700_v1  ;;  %v804_v3 = vrot.slane %v803_v6, 2 }
 0x110   : > { %v703_v9 = vrot.slane %v702_v7, 1  ;;  %v805_v2 = vadd.f32 %v804_v3, %v803_v6 }
 0x112   : > { %v704_v13 = vadd.f32 %v703_v9, %v702_v7  ;;  %v806_v46 = vrot.slane %v805_v2, 1 }
 0x114   : > { %706 = vst.msk [vmem:[%s284_s14] sm:$0x1] %vm705_vm4, %v704_v13  ;;  %v807_v10 = vadd.f32 %v806_v46, %v805_v2 }
 0x116   : > { %808 = vst.msk [vmem:[%s289_s17] sm:$0x1] %vm705_vm4, %v807_v10 }
 0x117 PF: > { %s16_s20 = sadd.s32 1, %s1127_s20   ;;  %s1612_s18 = smov %s1123_s19 }
 0x118   : > { %p13_p5 = scmp.ge.s32.totalorder %s16_s20, 4   ;;  %s1613_s19 = smov %s1615_s21 }
 0x11a   :  { %15 = sbr.rel (!%p13_p5) target bundleno = 2 (0x2), region = 86 }

</bundles_post_ra>
